<compile_context>
chip_gen: v6e
topology: v6e:2x2x1
jax: 0.10.0
libtpu: 0.0.40
codegen_flags: <defaults>
</compile_context>

<pallas_src>
import jax
import jax.numpy as jnp
from jax.experimental import pallas as pl
from jax.experimental.pallas import tpu as pltpu

A = 49        # attention feature dim (affine_v/g/s: hidden -> 49, affine_h: 49 -> 1)
AP = 128      # A zero-padded to one full lane tile
OUT_W = 128   # packed output slab width: [c_hat | alpha | beta | zero pad]


def atten_kernel(v_ref, h_ref, s_ref, w3_ref, wh_ref, out_ref):
    # Per-batch blocks: v_ref [K,H], h_ref/s_ref [T,H].
    # w3_ref [H, 3*AP] = [Wv | Wg | Ws], each block zero-padded to AP lanes.
    # wh_ref [1, AP]   = affine_h weight as a zero-padded lane row.
    V = v_ref[...]
    h = h_ref[...]
    s = s_ref[...]
    W3 = w3_ref[...]
    wh = wh_ref[...]

    K, H = V.shape
    T = h.shape[0]

    # ---- fused affine projections: one MXU push for affine_v / affine_g / affine_s
    X = jnp.concatenate([V, h, s], axis=0)                           # [K+2T, H]
    proj = jnp.dot(X, W3, preferred_element_type=jnp.float32)        # [K+2T, 3*AP]
    cv = proj[:K, 0:AP]                                              # content_v [K, AP]
    ct = proj[K:K + T, AP:2 * AP]                                    # content_t [T, AP]
    cs = proj[K + T:K + 2 * T, 2 * AP:3 * AP] + ct                   # content_s [T, AP]

    # ---- z[t,k] = sum_a tanh(ct[t,a] + cv[k,a]) * wh[a]
    # Unrolled loop over T: live tile is only [K, AP]; padded lanes (a >= A) give
    # tanh(0 + 0) * 0 = 0, so the reduction is exact.
    rows = []
    for t in range(T):
        c = jnp.tanh(cv + ct[t:t + 1, :])                            # [K, AP]
        rows.append(jnp.sum(c * wh, axis=-1))                        # [K]
    z = jnp.stack(rows, axis=0)                                      # [T, K]

    # ---- alpha_t = softmax over K
    m = jnp.max(z, axis=-1, keepdims=True)                           # [T, 1]
    e = jnp.exp(z - m)
    alpha = e * pl.reciprocal(jnp.sum(e, axis=-1, keepdims=True), approx=True)

    # ---- c_t = alpha_t @ V
    c_t = jnp.dot(alpha, V, preferred_element_type=jnp.float32)      # [T, H]

    # ---- z_t_extended = affine_h(tanh(content_s))
    z_ext = jnp.sum(jnp.tanh(cs) * wh, axis=-1, keepdims=True)       # [T, 1]

    # ---- beta_t = last column of softmax over concat([z, z_ext]) (no concat needed)
    m2 = jnp.maximum(m, z_ext)
    denom = jnp.sum(jnp.exp(z - m2), axis=-1, keepdims=True) + jnp.exp(z_ext - m2)
    beta = jnp.exp(z_ext - m2) * pl.reciprocal(denom, approx=True)   # [T, 1]

    # ---- c_hat_t = beta * s_t + (1 - beta) * c_t
    c_hat = beta * s + (1.0 - beta) * c_t                            # [T, H]

    # ---- single lane-dense packed store: [c_hat | alpha | beta | zeros]
    pad = jnp.zeros((T, OUT_W - (H + K + 1)), dtype=jnp.float32)
    out_ref[...] = jnp.concatenate([c_hat, alpha, beta, pad], axis=-1)


@jax.jit
def atten_forward(V, h_t, s_t, Wv, Wg, Ws, Wh):
    B, K, H = V.shape
    T = h_t.shape[1]
    assert H + K + 1 <= OUT_W

    # Trace-time weight prep (outside the kernel): fuse + zero-pad to lane tiles.
    W3 = jnp.zeros((H, 3 * AP), jnp.float32)
    W3 = W3.at[:, 0:A].set(Wv)
    W3 = W3.at[:, AP:AP + A].set(Wg)
    W3 = W3.at[:, 2 * AP:2 * AP + A].set(Ws)
    wh_row = jnp.zeros((1, AP), jnp.float32).at[0, :A].set(Wh[:, 0])

    sq = pl.Squeezed()
    slab = pl.pallas_call(
        atten_kernel,
        out_shape=jax.ShapeDtypeStruct((B, T, OUT_W), jnp.float32),
        grid_spec=pltpu.PrefetchScalarGridSpec(
            num_scalar_prefetch=0,
            grid=(B,),
            in_specs=[
                pl.BlockSpec((sq, K, H), lambda b: (b, 0, 0)),   # V
                pl.BlockSpec((sq, T, H), lambda b: (b, 0, 0)),   # h_t
                pl.BlockSpec((sq, T, H), lambda b: (b, 0, 0)),   # s_t
                pl.BlockSpec((H, 3 * AP), lambda b: (0, 0)),     # fused Wv|Wg|Ws
                pl.BlockSpec((1, AP), lambda b: (0, 0)),         # Wh as lane row
            ],
            out_specs=pl.BlockSpec((sq, T, OUT_W), lambda b: (b, 0, 0)),
        ),
        compiler_params=pltpu.CompilerParams(
            dimension_semantics=("parallel",)),   # shard batches across TCs on v7x
    )(V, h_t, s_t, W3, wh_row)

    c_hat = slab[:, :, :H]
    alpha = slab[:, :, H:H + K]
    beta = slab[:, :, H + K:H + K + 1]
    return c_hat, alpha, beta


def atten_reference(V, h_t, s_t, Wv, Wg, Ws, Wh):
    # Pure-JAX reference mirroring the torch forward (eval mode).
    cv = V @ Wv                                           # [B, K, A]
    ct = h_t @ Wg                                         # [B, T, A]
    content = ct[:, :, None, :] + cv[:, None, :, :]       # [B, T, K, A]
    z = jnp.squeeze(jnp.tanh(content) @ Wh, axis=-1)      # [B, T, K]
    alpha = jax.nn.softmax(z, axis=-1)
    c_t = jnp.einsum('btk,bkh->bth', alpha, V)
    cs = s_t @ Ws + ct
    z_ext = jnp.tanh(cs) @ Wh                             # [B, T, 1]
    ext = jnp.concatenate([z, z_ext], axis=-1)
    beta = jax.nn.softmax(ext, axis=-1)[:, :, -1:]
    c_hat = beta * s_t + (1.0 - beta) * c_t
    return c_hat, alpha, beta


if __name__ == "__main__":
    B, T, K, H = 2, 8, 49, 32   # K=49 regions (7x7 grid), hidden_size=32

    key = jax.random.PRNGKey(0)
    kV, kh, ks, k1, k2, k3, k4 = jax.random.split(key, 7)
    V   = jax.random.normal(kV, (B, K, H), dtype=jnp.float32)
    h_t = jax.random.normal(kh, (B, T, H), dtype=jnp.float32)
    s_t = jax.random.normal(ks, (B, T, H), dtype=jnp.float32)

    # "Linear" weights, stored as [in, out] (transpose of torch layout); Wh is [A, 1].
    Wv = 0.1 * jax.random.normal(k1, (H, A), dtype=jnp.float32)
    Wg = 0.1 * jax.random.normal(k2, (H, A), dtype=jnp.float32)
    Ws = 0.1 * jax.random.normal(k3, (H, A), dtype=jnp.float32)
    Wh = 0.1 * jax.random.normal(k4, (A, 1), dtype=jnp.float32)

    c_hat, alpha, beta = jax.block_until_ready(
        atten_forward(V, h_t, s_t, Wv, Wg, Ws, Wh))

    c_ref, a_ref, b_ref = atten_reference(V, h_t, s_t, Wv, Wg, Ws, Wh)
    assert c_hat.shape == (B, T, H) and alpha.shape == (B, T, K) and beta.shape == (B, T, 1)
    # Tolerance slightly looser than 1e-5 because softmax denominators use the
    # approximate EUP reciprocal (pl.reciprocal(approx=True)).
    assert jnp.allclose(c_hat, c_ref, atol=2e-3, rtol=2e-3)
    assert jnp.allclose(alpha, a_ref, atol=2e-3, rtol=2e-3)
    assert jnp.allclose(beta,  b_ref, atol=2e-3, rtol=2e-3)

    print("KERNEL_OK")
</pallas_src>

<mosaic_0001>
module attributes {stable_mosaic.version = 11 : i64} {
  func.func @atten_kernel(%arg0: i32, %arg1: memref<1x49x32xf32, #tpu.memory_space<vmem>>, %arg2: memref<1x8x32xf32, #tpu.memory_space<vmem>>, %arg3: memref<1x8x32xf32, #tpu.memory_space<vmem>>, %arg4: memref<32x384xf32, #tpu.memory_space<vmem>>, %arg5: memref<1x128xf32, #tpu.memory_space<vmem>>, %arg6: memref<1x8x128xf32, #tpu.memory_space<vmem>>) attributes {dimension_semantics = [#tpu.dimension_semantics<parallel>], iteration_bounds = array<i64: 2>, scalar_prefetch = 0 : i64, scratch_operands = 0 : i64, tpu.core_type = #tpu.core_type<tc>, window_params = [{transform_indices = @transform_0, window_bounds = array<i64: 1, 49, 32>}, {transform_indices = @transform_1, window_bounds = array<i64: 1, 8, 32>}, {transform_indices = @transform_2, window_bounds = array<i64: 1, 8, 32>}, {pipeline_mode = #tpu.pipeline_mode<synchronous>, transform_indices = @transform_3, window_bounds = array<i64: 32, 384>}, {pipeline_mode = #tpu.pipeline_mode<synchronous>, transform_indices = @transform_4, window_bounds = array<i64: 1, 128>}, {transform_indices = @transform_5, window_bounds = array<i64: 1, 8, 128>}]} {
    %c0 = arith.constant 0 : index
    %c0_0 = arith.constant 0 : index
    %c0_1 = arith.constant 0 : index
    %0 = vector.load %arg1[%c0, %c0_0, %c0_1] : memref<1x49x32xf32, #tpu.memory_space<vmem>>, vector<1x49x32xf32>
    %1 = vector.shape_cast %0 : vector<1x49x32xf32> to vector<49x32xf32>
    %c0_2 = arith.constant 0 : index
    %c0_3 = arith.constant 0 : index
    %c0_4 = arith.constant 0 : index
    %2 = vector.load %arg2[%c0_2, %c0_3, %c0_4] : memref<1x8x32xf32, #tpu.memory_space<vmem>>, vector<1x8x32xf32>
    %3 = vector.shape_cast %2 : vector<1x8x32xf32> to vector<8x32xf32>
    %c0_5 = arith.constant 0 : index
    %c0_6 = arith.constant 0 : index
    %c0_7 = arith.constant 0 : index
    %4 = vector.load %arg3[%c0_5, %c0_6, %c0_7] : memref<1x8x32xf32, #tpu.memory_space<vmem>>, vector<1x8x32xf32>
    %5 = vector.shape_cast %4 : vector<1x8x32xf32> to vector<8x32xf32>
    %c0_8 = arith.constant 0 : index
    %c0_9 = arith.constant 0 : index
    %6 = vector.load %arg4[%c0_8, %c0_9] : memref<32x384xf32, #tpu.memory_space<vmem>>, vector<32x384xf32>
    %c0_10 = arith.constant 0 : index
    %c0_11 = arith.constant 0 : index
    %7 = vector.load %arg5[%c0_10, %c0_11] : memref<1x128xf32, #tpu.memory_space<vmem>>, vector<1x128xf32>
    %8 = tpu.concatenate %1, %3, %5 in 0 : vector<49x32xf32>, vector<8x32xf32>, vector<8x32xf32> -> vector<65x32xf32>
    %cst = arith.constant dense<0.000000e+00> : vector<65x384xf32>
    %9 = tpu.matmul %8, %6, %cst {dimension_numbers = #tpu.dot_dimension_numbers<[1], [0], [0], [1], [0, 0, 1, 1], [], []>} : vector<65x32xf32>, vector<32x384xf32>, vector<65x384xf32> -> vector<65x384xf32>
    %10 = vector.extract_strided_slice %9 {offsets = [0, 0], sizes = [49, 128], strides = [1, 1]} : vector<65x384xf32> to vector<49x128xf32>
    %11 = vector.extract_strided_slice %9 {offsets = [49, 128], sizes = [8, 128], strides = [1, 1]} : vector<65x384xf32> to vector<8x128xf32>
    %12 = vector.extract_strided_slice %9 {offsets = [57, 256], sizes = [8, 128], strides = [1, 1]} : vector<65x384xf32> to vector<8x128xf32>
    %13 = arith.addf %12, %11 : vector<8x128xf32>
    %14 = vector.extract_strided_slice %11 {offsets = [0, 0], sizes = [1, 128], strides = [1, 1]} : vector<8x128xf32> to vector<1x128xf32>
    %15 = vector.broadcast %14 : vector<1x128xf32> to vector<49x128xf32>
    %16 = arith.addf %10, %15 : vector<49x128xf32>
    %17 = math.tanh %16 : vector<49x128xf32>
    %18 = vector.broadcast %7 : vector<1x128xf32> to vector<49x128xf32>
    %19 = arith.mulf %17, %18 : vector<49x128xf32>
    %cst_12 = arith.constant dense<0.000000e+00> : vector<49xf32>
    %20 = vector.multi_reduction <add>, %19, %cst_12 [1] : vector<49x128xf32> to vector<49xf32>
    %21 = vector.extract_strided_slice %11 {offsets = [1, 0], sizes = [1, 128], strides = [1, 1]} : vector<8x128xf32> to vector<1x128xf32>
    %22 = vector.broadcast %21 : vector<1x128xf32> to vector<49x128xf32>
    %23 = arith.addf %10, %22 : vector<49x128xf32>
    %24 = math.tanh %23 : vector<49x128xf32>
    %25 = vector.broadcast %7 : vector<1x128xf32> to vector<49x128xf32>
    %26 = arith.mulf %24, %25 : vector<49x128xf32>
    %cst_13 = arith.constant dense<0.000000e+00> : vector<49xf32>
    %27 = vector.multi_reduction <add>, %26, %cst_13 [1] : vector<49x128xf32> to vector<49xf32>
    %28 = vector.extract_strided_slice %11 {offsets = [2, 0], sizes = [1, 128], strides = [1, 1]} : vector<8x128xf32> to vector<1x128xf32>
    %29 = vector.broadcast %28 : vector<1x128xf32> to vector<49x128xf32>
    %30 = arith.addf %10, %29 : vector<49x128xf32>
    %31 = math.tanh %30 : vector<49x128xf32>
    %32 = vector.broadcast %7 : vector<1x128xf32> to vector<49x128xf32>
    %33 = arith.mulf %31, %32 : vector<49x128xf32>
    %cst_14 = arith.constant dense<0.000000e+00> : vector<49xf32>
    %34 = vector.multi_reduction <add>, %33, %cst_14 [1] : vector<49x128xf32> to vector<49xf32>
    %35 = vector.extract_strided_slice %11 {offsets = [3, 0], sizes = [1, 128], strides = [1, 1]} : vector<8x128xf32> to vector<1x128xf32>
    %36 = vector.broadcast %35 : vector<1x128xf32> to vector<49x128xf32>
    %37 = arith.addf %10, %36 : vector<49x128xf32>
    %38 = math.tanh %37 : vector<49x128xf32>
    %39 = vector.broadcast %7 : vector<1x128xf32> to vector<49x128xf32>
    %40 = arith.mulf %38, %39 : vector<49x128xf32>
    %cst_15 = arith.constant dense<0.000000e+00> : vector<49xf32>
    %41 = vector.multi_reduction <add>, %40, %cst_15 [1] : vector<49x128xf32> to vector<49xf32>
    %42 = vector.extract_strided_slice %11 {offsets = [4, 0], sizes = [1, 128], strides = [1, 1]} : vector<8x128xf32> to vector<1x128xf32>
    %43 = vector.broadcast %42 : vector<1x128xf32> to vector<49x128xf32>
    %44 = arith.addf %10, %43 : vector<49x128xf32>
    %45 = math.tanh %44 : vector<49x128xf32>
    %46 = vector.broadcast %7 : vector<1x128xf32> to vector<49x128xf32>
    %47 = arith.mulf %45, %46 : vector<49x128xf32>
    %cst_16 = arith.constant dense<0.000000e+00> : vector<49xf32>
    %48 = vector.multi_reduction <add>, %47, %cst_16 [1] : vector<49x128xf32> to vector<49xf32>
    %49 = vector.extract_strided_slice %11 {offsets = [5, 0], sizes = [1, 128], strides = [1, 1]} : vector<8x128xf32> to vector<1x128xf32>
    %50 = vector.broadcast %49 : vector<1x128xf32> to vector<49x128xf32>
    %51 = arith.addf %10, %50 : vector<49x128xf32>
    %52 = math.tanh %51 : vector<49x128xf32>
    %53 = vector.broadcast %7 : vector<1x128xf32> to vector<49x128xf32>
    %54 = arith.mulf %52, %53 : vector<49x128xf32>
    %cst_17 = arith.constant dense<0.000000e+00> : vector<49xf32>
    %55 = vector.multi_reduction <add>, %54, %cst_17 [1] : vector<49x128xf32> to vector<49xf32>
    %56 = vector.extract_strided_slice %11 {offsets = [6, 0], sizes = [1, 128], strides = [1, 1]} : vector<8x128xf32> to vector<1x128xf32>
    %57 = vector.broadcast %56 : vector<1x128xf32> to vector<49x128xf32>
    %58 = arith.addf %10, %57 : vector<49x128xf32>
    %59 = math.tanh %58 : vector<49x128xf32>
    %60 = vector.broadcast %7 : vector<1x128xf32> to vector<49x128xf32>
    %61 = arith.mulf %59, %60 : vector<49x128xf32>
    %cst_18 = arith.constant dense<0.000000e+00> : vector<49xf32>
    %62 = vector.multi_reduction <add>, %61, %cst_18 [1] : vector<49x128xf32> to vector<49xf32>
    %63 = vector.extract_strided_slice %11 {offsets = [7, 0], sizes = [1, 128], strides = [1, 1]} : vector<8x128xf32> to vector<1x128xf32>
    %64 = vector.broadcast %63 : vector<1x128xf32> to vector<49x128xf32>
    %65 = arith.addf %10, %64 : vector<49x128xf32>
    %66 = math.tanh %65 : vector<49x128xf32>
    %67 = vector.broadcast %7 : vector<1x128xf32> to vector<49x128xf32>
    %68 = arith.mulf %66, %67 : vector<49x128xf32>
    %cst_19 = arith.constant dense<0.000000e+00> : vector<49xf32>
    %69 = vector.multi_reduction <add>, %68, %cst_19 [1] : vector<49x128xf32> to vector<49xf32>
    %70 = vector.shape_cast %20 : vector<49xf32> to vector<1x49xf32>
    %71 = vector.shape_cast %27 : vector<49xf32> to vector<1x49xf32>
    %72 = vector.shape_cast %34 : vector<49xf32> to vector<1x49xf32>
    %73 = vector.shape_cast %41 : vector<49xf32> to vector<1x49xf32>
    %74 = vector.shape_cast %48 : vector<49xf32> to vector<1x49xf32>
    %75 = vector.shape_cast %55 : vector<49xf32> to vector<1x49xf32>
    %76 = vector.shape_cast %62 : vector<49xf32> to vector<1x49xf32>
    %77 = vector.shape_cast %69 : vector<49xf32> to vector<1x49xf32>
    %78 = tpu.concatenate %70, %71, %72, %73, %74, %75, %76, %77 in 0 : vector<1x49xf32>, vector<1x49xf32>, vector<1x49xf32>, vector<1x49xf32>, vector<1x49xf32>, vector<1x49xf32>, vector<1x49xf32>, vector<1x49xf32> -> vector<8x49xf32>
    %cst_20 = arith.constant dense<0xFF800000> : vector<8xf32>
    %79 = vector.multi_reduction <maximumf>, %78, %cst_20 [1] : vector<8x49xf32> to vector<8xf32>
    %80 = vector.shape_cast %79 : vector<8xf32> to vector<8x1xf32>
    %81 = vector.broadcast %80 : vector<8x1xf32> to vector<8x49xf32>
    %82 = arith.subf %78, %81 : vector<8x49xf32>
    %83 = math.exp %82 : vector<8x49xf32>
    %cst_21 = arith.constant dense<0.000000e+00> : vector<8xf32>
    %84 = vector.multi_reduction <add>, %83, %cst_21 [1] : vector<8x49xf32> to vector<8xf32>
    %85 = vector.shape_cast %84 : vector<8xf32> to vector<8x1xf32>
    %86 = tpu.reciprocal %85 {approx = true} : vector<8x1xf32> -> vector<8x1xf32>
    %87 = vector.broadcast %86 : vector<8x1xf32> to vector<8x49xf32>
    %88 = arith.mulf %83, %87 : vector<8x49xf32>
    %cst_22 = arith.constant dense<0.000000e+00> : vector<8x32xf32>
    %89 = tpu.matmul %88, %1, %cst_22 {dimension_numbers = #tpu.dot_dimension_numbers<[1], [0], [0], [1], [0, 0, 1, 1], [], []>} : vector<8x49xf32>, vector<49x32xf32>, vector<8x32xf32> -> vector<8x32xf32>
    %90 = math.tanh %13 : vector<8x128xf32>
    %91 = vector.broadcast %7 : vector<1x128xf32> to vector<8x128xf32>
    %92 = arith.mulf %90, %91 : vector<8x128xf32>
    %cst_23 = arith.constant dense<0.000000e+00> : vector<8xf32>
    %93 = vector.multi_reduction <add>, %92, %cst_23 [1] : vector<8x128xf32> to vector<8xf32>
    %94 = vector.shape_cast %93 : vector<8xf32> to vector<8x1xf32>
    %95 = arith.maximumf %80, %94 : vector<8x1xf32>
    %96 = vector.broadcast %95 : vector<8x1xf32> to vector<8x49xf32>
    %97 = arith.subf %78, %96 : vector<8x49xf32>
    %98 = math.exp %97 : vector<8x49xf32>
    %cst_24 = arith.constant dense<0.000000e+00> : vector<8xf32>
    %99 = vector.multi_reduction <add>, %98, %cst_24 [1] : vector<8x49xf32> to vector<8xf32>
    %100 = vector.shape_cast %99 : vector<8xf32> to vector<8x1xf32>
    %101 = arith.subf %94, %95 : vector<8x1xf32>
    %102 = math.exp %101 : vector<8x1xf32>
    %103 = arith.addf %100, %102 : vector<8x1xf32>
    %104 = arith.subf %94, %95 : vector<8x1xf32>
    %105 = math.exp %104 : vector<8x1xf32>
    %106 = tpu.reciprocal %103 {approx = true} : vector<8x1xf32> -> vector<8x1xf32>
    %107 = arith.mulf %105, %106 : vector<8x1xf32>
    %108 = vector.broadcast %107 : vector<8x1xf32> to vector<8x32xf32>
    %109 = arith.mulf %108, %5 : vector<8x32xf32>
    %cst_25 = arith.constant 1.000000e+00 : f32
    %110 = vector.broadcast %cst_25 : f32 to vector<8x1xf32>
    %111 = arith.subf %110, %107 : vector<8x1xf32>
    %112 = vector.broadcast %111 : vector<8x1xf32> to vector<8x32xf32>
    %113 = arith.mulf %112, %89 : vector<8x32xf32>
    %114 = arith.addf %109, %113 : vector<8x32xf32>
    %cst_26 = arith.constant 0.000000e+00 : f32
    %115 = vector.broadcast %cst_26 : f32 to vector<8x46xf32>
    %116 = tpu.concatenate %114, %88, %107, %115 in 1 : vector<8x32xf32>, vector<8x49xf32>, vector<8x1xf32>, vector<8x46xf32> -> vector<8x128xf32>
    %c0_27 = arith.constant 0 : index
    %c0_28 = arith.constant 0 : index
    %c0_29 = arith.constant 0 : index
    %117 = vector.load %arg6[%c0_27, %c0_28, %c0_29] : memref<1x8x128xf32, #tpu.memory_space<vmem>>, vector<1x8x128xf32>
    %118 = vector.shape_cast %117 : vector<1x8x128xf32> to vector<8x128xf32>
    %119 = vector.shape_cast %116 : vector<8x128xf32> to vector<1x8x128xf32>
    tpu.vector_store %arg6[%c0_27, %c0_28, %c0_29], %119 {strides = array<i32>} : memref<1x8x128xf32, #tpu.memory_space<vmem>>, vector<1x8x128xf32>,
    return
  }
  func.func @transform_0(%arg0: i32) -> (i32, i32, i32) {
    %c0_i32 = arith.constant 0 : i32
    %c0_i32_0 = arith.constant 0 : i32
    %c0_i32_1 = arith.constant 0 : i32
    return %arg0, %c0_i32, %c0_i32_0 : i32, i32, i32
  }
  func.func @transform_1(%arg0: i32) -> (i32, i32, i32) {
    %c0_i32 = arith.constant 0 : i32
    %c0_i32_0 = arith.constant 0 : i32
    %c0_i32_1 = arith.constant 0 : i32
    return %arg0, %c0_i32, %c0_i32_0 : i32, i32, i32
  }
  func.func @transform_2(%arg0: i32) -> (i32, i32, i32) {
    %c0_i32 = arith.constant 0 : i32
    %c0_i32_0 = arith.constant 0 : i32
    %c0_i32_1 = arith.constant 0 : i32
    return %arg0, %c0_i32, %c0_i32_0 : i32, i32, i32
  }
  func.func @transform_3(%arg0: i32) -> (i32, i32) {
    %c0_i32 = arith.constant 0 : i32
    %c0_i32_0 = arith.constant 0 : i32
    %c0_i32_1 = arith.constant 0 : i32
    return %c0_i32, %c0_i32_0 : i32, i32
  }
  func.func @transform_4(%arg0: i32) -> (i32, i32) {
    %c0_i32 = arith.constant 0 : i32
    %c0_i32_0 = arith.constant 0 : i32
    %c0_i32_1 = arith.constant 0 : i32
    return %c0_i32, %c0_i32_0 : i32, i32
  }
  func.func @transform_5(%arg0: i32) -> (i32, i32, i32) {
    %c0_i32 = arith.constant 0 : i32
    %c0_i32_0 = arith.constant 0 : i32
    %c0_i32_1 = arith.constant 0 : i32
    return %arg0, %c0_i32, %c0_i32_0 : i32, i32, i32
  }
}

</mosaic_0001>

<bundles_post_ra>
// kernel: atten_forward.1
= control target key start
LH: loop header
LB: loop body
LE: loop exit
PB: predicated region body
PF: predicated region fallthrough
CT: control target
= control target key end

     0   :  { %s1777_s18 = smov 0   ;;  %s2443_s0 = inlined_call_operand.vmem [shape: f32[2,49,32], index: 0, kind: input, shape index: {}]   ;;  %s2444_s1 = inlined_call_operand.vmem [shape: f32[2,8,32], index: 1, kind: input, shape index: {}]   ;;  %s2445_s2 = inlined_call_operand.vmem [shape: f32[2,8,32], index: 2, kind: input, shape index: {}]   ;;  %s2446_s3 = inlined_call_operand.vmem [shape: f32[32,384], index: 3, kind: input, shape index: {}]   ;;  %s2447_s4 = inlined_call_operand.vmem [shape: f32[1,128], index: 4, kind: input, shape index: {}]   ;;  %s2448_s5 = inlined_call_operand.vmem [shape: f32[2,8,128], index: 5, kind: output, shape index: {}]  }
   0x1 LB: > { %s1485_s19 = sadd.s32 4294967295, %s1740_s18   ;;  %p1489_p0 = scmp.ge.s32.totalorder %s1740_s18, 1  ;;  %s1740_s18 = sphi %s1777_s18, %s15_s18  }
   0x2   : > { %p205_p1 = scmp.lt.s32.totalorder %s1740_s18, 3 }
   0x4   : > { %p206_p2 = pnand %p1489_p0, %p205_p1 }
   0x5   : > { %p240_p3 = scmp.lt.s32.totalorder (!%p206_p2), %s1485_s19, 1  ;;  %s1745_s8 = smov (!%p206_p2), 32  }
   0x6   : > { %209 = sbr.rel (%p206_p2) target bundleno = 1113 (0x459), region = 40  ;;  %s1746_s9 = smov (!%p206_p2), 81  }
   0xb   : > { %v276_v0 = vld [vmem:[%s2446_s3 + $0x50] sm:$0xff]  ;;  %v275_v1 = vld [vmem:[%s2446_s3 + $0x48] sm:$0xff]  ;;  %v277_v2 = vld [vmem:[%s2446_s3 + $0x58] sm:$0xff]  ;;  %v1742_v3 = vmov 0.0   ;;  %s2450_s19 = smov (!%p240_p3, %s1485_s19), 1  ;;  %vm288_vm0 = vcmask 261120   ;;  %v530_v42 = vlaneseq }
   0xc   : > { %339 = vmatprep.subr.mxu0 %v276_v0  ;;  %1538 = vmatprep.subr.mxu1 %v1742_v3  ;;  %v273_v4 = vld [vmem:[%s2446_s3 + $0x38] sm:$0xff]  ;;  %v272_v5 = vld [vmem:[%s2446_s3 + $0x30] sm:$0xff]  ;;  %v274_v6 = vld [vmem:[%s2446_s3 + $0x40] sm:$0xff]  ;;  %s1590_s15 = smul.u32 56, %s2450_s19  ;;  %vm1743_vm1 = vmmov 0   ;;  %vm285_vm2 = vcmask 1040384  }
   0xd   : > { %340 = vmatpush1.msra.mxu0 %v275_v1  ;;  %1539 = vmatpush3.msra.mxu1 %v277_v2  ;;  %v270_v7 = vld [vmem:[%s2446_s3 + $0x20] sm:$0xff]  ;;  %v269_v8 = vld [vmem:[%s2446_s3 + $0x18] sm:$0xff]  ;;  %v271_v9 = vld [vmem:[%s2446_s3 + $0x28] sm:$0xff]  ;;  %s1861_s25 = sshll.u32 %s2450_s19, 3  ;;  %v1929_v47 = vshrl.u32 %v530_v42, 7  ;;  %vm1311_vm3 = vcmask 1047553  }
   0xe   : > { %341 = vmatprep.subr.mxu0 %v273_v4  ;;  %1540 = vmatprep.subr.mxu1 %v1742_v3  ;;  %v267_v10 = vld [vmem:[%s2446_s3 + $0x8] sm:$0xff]  ;;  %v266_v11 = vld [vmem:[%s2446_s3] sm:$0xff]  ;;  %v268_v12 = vld [vmem:[%s2446_s3 + $0x10] sm:$0xff]  ;;  %s1830_s24 = scalar_lea.vmem %s2443_s0, %s1590_s15  ;;  %s248_s28 = scalar_lea.vmem %s2444_s1, %s1861_s25  ;;  %vm874_vm4 = vcmask 130112   ;;  %vm881_vm5 = vcmask 195712   ;;  %vm888_vm6 = vcmask 261312  }
   0xf   : > { %342 = vmatpush1.msra.mxu0 %v272_v5  ;;  %1541 = vmatpush3.msra.mxu1 %v274_v6  ;;  %v1834_v13 = vld [vmem:[%s1830_s24] sm:$0xff]  ;;  %v258_v14 = vld [vmem:[%s1830_s24 + $0x8] sm:$0xff]  ;;  %v263_v15 = vld [vmem:[%s1830_s24 + $0x30] sm:$0x1]  ;;  %s252_s30 = scalar_lea.vmem %s2445_s2, %s1861_s25  ;;  %v532_v52 = vsub.s32 1, %v1929_v47  ;;  %v578_v53 = vsub.s32 2, %v1929_v47  ;;  %s256_s12 = scalar_lea.vmem %s2448_s5, %s1861_s25 }
  0x10   : > { %343 = vmatprep.subr.mxu0 %v270_v7  ;;  %1542 = vmatprep.subr.mxu1 %v1742_v3  ;;  %v259_v16 = vld [vmem:[%s1830_s24 + $0x10] sm:$0xff]  ;;  %v262_v17 = vld [vmem:[%s1830_s24 + $0x28] sm:$0xff]  ;;  %v260_v18 = vld [vmem:[%s1830_s24 + $0x18] sm:$0xff]  ;;  %v618_v60 = vsub.s32 3, %v1929_v47  ;;  %v658_v7 = vsub.s32 4, %v1929_v47  ;;  %vm895_vm7 = vcmask 326912  }
  0x11   : > { %344 = vmatpush1.msra.mxu0 %v269_v8  ;;  %1543 = vmatpush3.msra.mxu1 %v271_v9  ;;  %v261_v19 = vld [vmem:[%s1830_s24 + $0x20] sm:$0xff]  ;;  %vm902_vm8 = vcmask 392512   ;;  %vm909_vm9 = vcmask 458112   ;;  %vm1207_vm10 = vcmask 1041408   ;;  %vm1209_vm11 = vcmask 1042432  }
  0x12   : > { %345 = vmatprep.subr.mxu0 %v267_v10  ;;  %1544 = vmatprep.subr.mxu1 %v1742_v3  ;;  %v264_v20 = vld [vmem:[%s248_s28] sm:$0xff]  ;;  %vm1211_vm12 = vcmask 1043456   ;;  %vm1213_vm13 = vcmask 1044480   ;;  %vm1215_vm14 = vcmask 1045504   ;;  %vm1217_vm15 = vcmask 1046528  }
  0x13   : > { %346 = vmatpush1.msra.mxu0 %v266_v11  ;;  %379 = vmatprep.mubr.f32.mxu0 %v1742_v3  ;;  %v280_v21 = vrot.slane %v264_v20, 7  ;;  %v265_v22 = vld [vmem:[%s252_s30] sm:$0xff] }
  0x14   : > { %1545 = vmatpush3.msra.mxu1 %v268_v12  ;;  %1546 = vmatprep.mubr.msk.f32.mxu1 %vm1743_vm1, %v1742_v3  ;;  %v1894_v23 = vrot.slane %v265_v22, 7 }
  0x15   : > { %1494 = vmatmul.mubr.msk.f32.vlgmr.msra.gmra.mxu0 %vm288_vm0, %v1834_v13  ;;  %1547 = vmatmul.mubr.msk.f32.vlgmr.msra.gmra.mxu1 %vm288_vm0, %v1834_v13  ;;  %v286_v24 = vsel %vm285_vm2, %v263_v15, %v280_v21 }
  0x16   : > { %384 = vmatprep.mubr.f32.mxu0 %v1742_v3  ;;  %1549 = vmatprep.mubr.msk.f32.mxu1 %vm1743_vm1, %v1742_v3  ;;  %v287_v25 = vsel %vm285_vm2, %v280_v21, %v1894_v23 }
  0x17   : > { %1573 = vmatprep.subr.mxu0 %v1742_v3 }
  0x18   : > { %1574 = vmatpush3.msk.msra.mxu0 %vm285_vm2, %v263_v15  ;;  %v698_v15 = vsub.s32 5, %v1929_v47 }
  0x19   : > { %1495 = vmatmul.mubr.msk.f32.gmra.mxu0 %vm288_vm0, %v258_v14  ;;  %1550 = vmatmul.mubr.msk.f32.gmra.mxu1 %vm288_vm0, %v258_v14 }
  0x1a   : > { %389 = vmatprep.mubr.f32.mxu0 %v1742_v3  ;;  %1552 = vmatprep.mubr.msk.f32.mxu1 %vm1743_vm1, %v1742_v3 }
  0x1b   : > { %1575 = vmatprep.subr.mxu0 %v1742_v3 }
  0x1c   : > { %1576 = vmatpush3.msra.mxu0 %v262_v17 }
  0x1d   : > { %1496 = vmatmul.mubr.msk.f32.gmra.mxu0 %vm288_vm0, %v259_v16  ;;  %1553 = vmatmul.mubr.msk.f32.gmra.mxu1 %vm288_vm0, %v259_v16 }
  0x1e   : > { %394 = vmatprep.mubr.f32.mxu0 %v1742_v3  ;;  %1555 = vmatprep.mubr.msk.f32.mxu1 %vm1743_vm1, %v1742_v3 }
  0x1f   : > { %1577 = vmatprep.subr.mxu0 %v1742_v3 }
  0x20   : > { %1578 = vmatpush3.msra.mxu0 %v261_v19 }
  0x21   : > { %1497 = vmatmul.mubr.msk.f32.gmra.mxu0 %vm288_vm0, %v260_v18  ;;  %1556 = vmatmul.mubr.msk.f32.gmra.mxu1 %vm288_vm0, %v260_v18 }
  0x22   : > { %399 = vmatprep.mubr.f32.mxu0 %v1742_v3  ;;  %1558 = vmatprep.mubr.msk.f32.mxu1 %vm1743_vm1, %v1742_v3 }
  0x23   : > { %1579 = vmatprep.subr.mxu0 %v1742_v3 }
  0x24   : > { %1580 = vmatpush3.msra.mxu0 %v260_v18 }
  0x25   : > { %1498 = vmatmul.mubr.msk.f32.gmra.mxu0 %vm288_vm0, %v261_v19  ;;  %1559 = vmatmul.mubr.msk.f32.gmra.mxu1 %vm288_vm0, %v261_v19 }
  0x26   : > { %404 = vmatprep.mubr.f32.mxu0 %v1742_v3  ;;  %1561 = vmatprep.mubr.msk.f32.mxu1 %vm1743_vm1, %v1742_v3 }
  0x27   : > { %1581 = vmatprep.subr.mxu0 %v1742_v3 }
  0x28   : > { %1582 = vmatpush3.msra.mxu0 %v259_v16 }
  0x29   : > { %1499 = vmatmul.mubr.msk.f32.gmra.mxu0 %vm288_vm0, %v262_v17  ;;  %1562 = vmatmul.mubr.msk.f32.gmra.mxu1 %vm288_vm0, %v262_v17  ;;  %v818_v17 = vsub.s32 0, %v1929_v47 }
  0x2a   : > { %409 = vmatprep.mubr.f32.mxu0 %v1742_v3  ;;  %1564 = vmatprep.mubr.msk.f32.mxu1 %vm1743_vm1, %v1742_v3 }
  0x2b   : > { %1583 = vmatprep.subr.mxu0 %v1742_v3 }
  0x2c   : > { %1584 = vmatpush3.msra.mxu0 %v258_v14 }
  0x2d   : > { %1500 = vmatmul.mubr.msk.f32.gmra.mxu0 %vm288_vm0, %v286_v24  ;;  %1565 = vmatmul.mubr.msk.f32.gmra.mxu1 %vm288_vm0, %v286_v24 }
  0x2e   : > { %415 = vmatprep.mubr.f32.mxu0 %v1742_v3  ;;  %1567 = vmatprep.mubr.msk.f32.mxu1 %vm1743_vm1, %v1742_v3 }
  0x2f   : > { %1585 = vmatprep.subr.mxu0 %v1742_v3 }
  0x30   : > { %1586 = vmatpush3.msra.mxu0 %v1834_v13 }
  0x31   : > { %1501 = vmatmul.mubr.msk.f32.gmra.mxu0 %vm288_vm0, %v287_v25  ;;  %1568 = vmatmul.mubr.msk.f32.gmra.mxu1 %vm288_vm0, %v287_v25 }
  0x32   : > { %1570 = vmatprep.mubr.msk.f32.mxu1 %vm1743_vm1, %v1742_v3  ;;  %420 = vmatprep.mubr.f32.mxu0 %v1742_v3 }
  0x35   : > { %1571 = vmatmul.mubr.msk.f32.gmra.mxu1 %vm288_vm0, %v1894_v23  ;;  %1502 = vmatmul.mubr.msk.f32.gmra.mxu0 %vm288_vm0, %v1894_v23 }
  0x36   : > { %1587 = vmatprep.mubr.msk.f32.mxu0 %vm1743_vm1, %v1742_v3  ;;  %vm1219_vm1 = vcmask 400384  }
  0xd5   : > { %v1918_v26 = vpop.f32.mrf.mxu0  ;;  %v491_v27 = vpop.f32.mrf.mxu1 }
  0xd7   : > { %v383_v28 = vpop.f32.mrf.mxu0  ;;  %v1548_v29 = vpop.f32.mrf.mxu1 }
  0xd8   : > { %v738_v28 = vsub.s32 6, %v1929_v47 }
  0xd9   : > { %v1920_v30 = vpop.f32.mrf.mxu0  ;;  %v495_v31 = vpop.f32.mrf.mxu1 }
  0xdb   : > { %v388_v32 = vpop.f32.mrf.mxu0  ;;  %v1551_v33 = vpop.f32.mrf.mxu1 }
  0xdc   : > { %v1993_v32 = vld [vmem:[%s2447_s4] ss:$0 sm:$0xff] }
  0xdd   : > { %v1922_v34 = vpop.f32.mrf.mxu0  ;;  %v499_v35 = vpop.f32.mrf.mxu1 }
  0xdf   : > { %v393_v36 = vpop.f32.mrf.mxu0  ;;  %v1554_v37 = vpop.f32.mrf.mxu1 }
  0xe1   : > { %v1924_v38 = vpop.f32.mrf.mxu0  ;;  %v503_v39 = vpop.f32.mrf.mxu1 }
  0xe3   : > { %v398_v40 = vpop.f32.mrf.mxu0  ;;  %v1557_v41 = vpop.f32.mrf.mxu1 }
  0xe5   : > { %v1926_v43 = vpop.f32.mrf.mxu0  ;;  %v507_v44 = vpop.f32.mrf.mxu1 }
  0xe7   : > { %v403_v45 = vpop.f32.mrf.mxu0  ;;  %v1560_v46 = vpop.f32.mrf.mxu1 }
  0xe9   : > { %v1931_v48 = vpop.f32.mrf.mxu0  ;;  %v511_v49 = vpop.f32.mrf.mxu1 }
  0xeb   : > { %v408_v50 = vpop.f32.mrf.mxu0  ;;  %v1563_v51 = vpop.f32.mrf.mxu1 }
  0xed   : > { %v1935_v54 = vpop.f32.mrf.mxu0  ;;  %v515_v55 = vpop.f32.mrf.mxu1 }
  0xef   : > { %v1937_v56 = vpop.f32.mrf.mxu0  ;;  %v1566_v57 = vpop.f32.mrf.mxu1 }
  0xf0   : > { %v1940_v58 = vrot.slane %v1937_v56, %v532_v52  ;;  %v1943_v59 = vrot.slane %v1937_v56, %v578_v53  ;;  %v1956_v6 = vrot.slane %v1937_v56, %v618_v60  ;;  %v1964_v14 = vrot.slane %v1937_v56, %v658_v7 }
  0xf1   : > { %v417_v61 = vpop.f32.mrf.mxu0  ;;  %v519_v62 = vpop.f32.mrf.mxu1  ;;  %v1977_v21 = vrot.slane %v1937_v56, %v698_v15 }
  0xf2   : > { %v528_v63 = vadd.f32 %v519_v62, %v1937_v56  ;;  %v580_v0 = vadd.f32 %v1943_v59, %v1918_v26  ;;  %v534_v1 = vadd.f32 %v1940_v58, %v1918_v26  ;;  %v581_v3 = vadd.f32 %v1943_v59, %v1920_v30 }
  0xf3   : > { %v418_v2 = vpop.f32.mrf.mxu0  ;;  %v1569_v4 = vpop.f32.mrf.mxu1  ;;  %v535_v5 = vadd.f32 %v1940_v58, %v1920_v30  ;;  %v582_v10 = vadd.f32 %v1943_v59, %v1922_v34  ;;  %v536_v13 = vadd.f32 %v1940_v58, %v1922_v34  ;;  %v621_v16 = vadd.f32 %v1956_v6, %v1920_v30 }
  0xf4   : > { %1606 = vtanh.f32 %v528_v63  ;;  %v620_v18 = vadd.f32 %v1956_v6, %v1918_v26  ;;  %v583_v19 = vadd.f32 %v1943_v59, %v1924_v38  ;;  %v537_v20 = vadd.f32 %v1940_v58, %v1924_v38 }
  0xf5   : > { %1608 = vtanh.f32 %v580_v0  ;;  %v524_v8 = vpop.f32.mrf.mxu1  ;;  %v422_v9 = vpop.f32.mrf.mxu0  ;;  %v660_v22 = vadd.f32 %v1964_v14, %v1918_v26  ;;  %v819_v24 = vrot.slane %v418_v2, %v818_v17  ;;  %v622_v25 = vadd.f32 %v1956_v6, %v1922_v34 }
  0xf6   : > { %1610 = vtanh.f32 %v534_v1  ;;  %v1983_v27 = vadd.f32 %v524_v8, %v418_v2  ;;  %v538_v29 = vadd.f32 %v1940_v58, %v1926_v43  ;;  %v661_v31 = vadd.f32 %v1964_v14, %v1920_v30 }
  0xf7   : > { %1612 = vtanh.f32 %v581_v3  ;;  %v1572_v11 = vpop.f32.mrf.mxu1  ;;  %v423_v12 = vpop.f32.mrf.mxu0  ;;  %v623_v33 = vadd.f32 %v1956_v6, %v1924_v38  ;;  %v1999_v35 = vadd.f32 %v1943_v59, %v1935_v54  ;;  %v2003_v36 = vadd.f32 %v1940_v58, %v1935_v54 }
  0xf8   : > { %1614 = vtanh.f32 %v535_v5  ;;  %v584_v39 = vadd.f32 %v1943_v59, %v1926_v43  ;;  %v2009_v40 = vadd.f32 %v1964_v14, %v1935_v54  ;;  %v2013_v41 = vadd.f32 %v1956_v6, %v1935_v54 }
  0xf9   : > { %1616 = vtanh.f32 %v582_v10  ;;  %v700_v45 = vadd.f32 %v1977_v21, %v1918_v26  ;;  %v662_v46 = vadd.f32 %v1964_v14, %v1922_v34  ;;  %v2020_v49 = vadd.f32 %v819_v24, %v1918_v26 }
  0xfa   : > { %1618 = vtanh.f32 %v536_v13  ;;  %v2024_v52 = vadd.f32 %v819_v24, %v1920_v30  ;;  %v2027_v53 = vadd.f32 %v819_v24, %v1922_v34  ;;  %v2031_v60 = vadd.f32 %v819_v24, %v1926_v43 }
  0xfb   : > { %1620 = vtanh.f32 %v621_v16  ;;  %v2034_v61 = vadd.f32 %v819_v24, %v1924_v38  ;;  %v539_v63 = vadd.f32 %v1940_v58, %v1931_v48  ;;  %v2039_v0 = vadd.f32 %v819_v24, %v1931_v48 }
  0xfc   : > { %1622 = vtanh.f32 %v620_v18  ;;  %v2042_v1 = vadd.f32 %v819_v24, %v1935_v54  ;;  %v701_v2 = vadd.f32 %v1977_v21, %v1920_v30  ;;  %v2050_v4 = vrot.slane %v1937_v56, %v738_v28 }
  0xfd   : > { %1624 = vtanh.f32 %v583_v19  ;;  %v624_v58 = vadd.f32 %v1956_v6, %v1926_v43  ;;  %v585_v9 = vadd.f32 %v1943_v59, %v1931_v48  ;;  %v702_v11 = vadd.f32 %v1977_v21, %v1922_v34 }
  0xfe   : > { %1626 = vtanh.f32 %v537_v20  ;;  %v663_v13 = vadd.f32 %v1964_v14, %v1924_v38  ;;  %v741_v17 = vadd.f32 %v2050_v4, %v1920_v30  ;;  %v778_v18 = vsub.s32 7, %v1929_v47 }
  0xff   : > { %1628 = vtanh.f32 %v660_v22  ;;  %v740_v20 = vadd.f32 %v2050_v4, %v1918_v26  ;;  %v664_v24 = vadd.f32 %v1964_v14, %v1926_v43  ;;  %v625_v28 = vadd.f32 %v1956_v6, %v1931_v48 }
 0x100   : > { %1630 = vtanh.f32 %v622_v25  ;;  %v665_v6 = vadd.f32 %v1964_v14, %v1931_v48 }
 0x101   : > { %v1607_v37 = vpop.eup %1606  ;;  %1632 = vtanh.f32 %v538_v29 }
 0x102   : > { %v1609_v44 = vpop.eup %1608  ;;  %1634 = vtanh.f32 %v661_v31  ;;  %v2047_v3 = vmul.f32 %v1607_v37, %v1993_v32 }
 0x103   : > { %v1611_v50 = vpop.eup %1610  ;;  %v594_v51 = vmul.f32 %v1609_v44, %v1993_v32  ;;  %1636 = vtanh.f32 %v623_v33  ;;  %v742_v33 = vadd.f32 %v2050_v4, %v1922_v34 }
 0x104   : > { %v1613_v55 = vpop.eup %1612  ;;  %v554_v57 = vmul.f32 %v1611_v50, %v1993_v32  ;;  %1638 = vtanh.f32 %v584_v39  ;;  %v2077_v39 = vrot.slane %v1937_v56, %v778_v18 }
 0x105   : > { %v1615_v62 = vpop.eup %1614  ;;  %601 = vadd.xlane.f32.xlu1 %v594_v51  ;;  %v595_v5 = vmul.f32 %v1613_v55, %v1993_v32  ;;  %1640 = vtanh.f32 %v700_v45  ;;  %v703_v45 = vadd.f32 %v1977_v21, %v1924_v38  ;;  %v704_v51 = vadd.f32 %v1977_v21, %v1926_v43 }
 0x106   : > { %561 = vadd.xlane.f32.xlu0 %v554_v57  ;;  %v1617_v7 = vpop.eup %1616  ;;  %v555_v8 = vmul.f32 %v1615_v62, %v1993_v32  ;;  %1642 = vtanh.f32 %v662_v46  ;;  %v743_v57 = vadd.f32 %v2050_v4, %v1924_v38  ;;  %v782_v14 = vadd.f32 %v2077_v39, %v1922_v34 }
 0x107   : > { %v1619_v10 = vpop.eup %1618  ;;  %1644 = vtanh.f32 %v539_v63  ;;  %v596_v16 = vmul.f32 %v1617_v7, %v1993_v32  ;;  %v705_v7 = vadd.f32 %v1977_v21, %v1931_v48  ;;  %v784_v18 = vadd.f32 %v2077_v39, %v1926_v43 }
 0x108   : > { %v1621_v12 = vpop.eup %1620  ;;  %1646 = vtanh.f32 %v701_v2  ;;  %v556_v19 = vmul.f32 %v1619_v10, %v1993_v32 }
 0x109   : > { %603 = vadd.xlane.f32.xlu1 %v595_v5  ;;  %v1623_v15 = vpop.eup %1622  ;;  %1648 = vtanh.f32 %v624_v58  ;;  %v635_v31 = vmul.f32 %v1621_v12, %v1993_v32  ;;  %v744_v5 = vadd.f32 %v2050_v4, %v1926_v43 }
 0x10a   : > { %563 = vadd.xlane.f32.xlu0 %v555_v8  ;;  %v1625_v59 = vpop.eup %1624  ;;  %1650 = vtanh.f32 %v585_v9  ;;  %v634_v44 = vmul.f32 %v1623_v15, %v1993_v32 }
 0x10b   : > { %v1627_v22 = vpop.eup %1626  ;;  %1652 = vtanh.f32 %v702_v11  ;;  %v597_v55 = vmul.f32 %v1625_v59, %v1993_v32  ;;  %v745_v11 = vadd.f32 %v2050_v4, %v1931_v48 }
 0x10c   : > { %v1629_v25 = vpop.eup %1628  ;;  %1654 = vtanh.f32 %v663_v13  ;;  %v557_v63 = vmul.f32 %v1627_v22, %v1993_v32  ;;  %v783_v13 = vadd.f32 %v2077_v39, %v1924_v38 }
 0x10d   : > { %605 = vadd.xlane.f32.xlu1 %v596_v16  ;;  %v1631_v29 = vpop.eup %1630  ;;  %1656 = vtanh.f32 %v741_v17  ;;  %v674_v9 = vmul.f32 %v1629_v25, %v1993_v32  ;;  %v785_v16 = vadd.f32 %v2077_v39, %v1931_v48  ;;  %v786_v25 = vadd.f32 %v2077_v39, %v1935_v54 }
 0x10e   : > { %565 = vadd.xlane.f32.xlu0 %v556_v19  ;;  %v1633_v37 = vpop.eup %1632  ;;  %1658 = vtanh.f32 %v740_v20  ;;  %v636_v34 = vmul.f32 %v1631_v29, %v1993_v32  ;;  %v706_v29 = vadd.f32 %v1977_v21, %v1935_v54 }
 0x10f   : > { %v1635_v46 = vpop.eup %1634  ;;  %1660 = vtanh.f32 %v664_v24  ;;  %v558_v59 = vmul.f32 %v1633_v37, %v1993_v32 }
 0x110   : > { %v1637_v50 = vpop.eup %1636  ;;  %1662 = vtanh.f32 %v625_v28  ;;  %v675_v38 = vmul.f32 %v1635_v46, %v1993_v32 }
 0x111   : > { %643 = vadd.xlane.f32.xlu1 %v635_v31  ;;  %v1639_v56 = vpop.eup %1638  ;;  %1664 = vtanh.f32 %v742_v33  ;;  %v746_v33 = vadd.f32 %v2050_v4, %v1935_v54 }
 0x112   : > { %641 = vadd.xlane.f32.xlu0 %v634_v44  ;;  %v1641_v62 = vpop.eup %1640  ;;  %1666 = vtanh.f32 %v703_v45  ;;  %v598_v43 = vmul.f32 %v1639_v56, %v1993_v32 }
 0x113   : > { %v1643_v2 = vpop.eup %1642  ;;  %1668 = vtanh.f32 %v665_v6 }
 0x114   : > { %v2094_v58 = vpop.eup %1644  ;;  %1670 = vtanh.f32 %v704_v51 }
 0x115   : > { %607 = vadd.xlane.f32.xlu1 %v597_v55  ;;  %v2098_v8 = vpop.eup %1646  ;;  %1672 = vtanh.f32 %v743_v57  ;;  %v559_v6 = vmul.f32 %v2094_v58, %v1993_v32 }
 0x116   : > { %567 = vadd.xlane.f32.xlu0 %v557_v63  ;;  %v2101_v10 = vpop.eup %1648  ;;  %1674 = vtanh.f32 %v782_v14  ;;  %v715_v56 = vmul.f32 %v2098_v8, %v1993_v32 }
 0x117   : > { %v2106_v12 = vpop.eup %1650  ;;  %1676 = vtanh.f32 %v744_v5 }
 0x118   : > { %v2110_v15 = vpop.eup %1652  ;;  %1678 = vtanh.f32 %v705_v7  ;;  %v599_v58 = vmul.f32 %v2106_v12, %v1993_v32  ;;  %v780_v7 = vadd.f32 %v2077_v39, %v1918_v26 }
 0x119   : > { %681 = vadd.xlane.f32.xlu1 %v674_v9  ;;  %v2114_v17 = vpop.eup %1654  ;;  %1680 = vtanh.f32 %v1983_v27  ;;  %v637_v27 = vmul.f32 %v1637_v50, %v1993_v32 }
 0x11a   : > { %645 = vadd.xlane.f32.xlu0 %v636_v34  ;;  %v2120_v19 = vpop.eup %1656  ;;  %1682 = vtanh.f32 %v745_v11  ;;  %v716_v34 = vmul.f32 %v2110_v15, %v1993_v32 }
 0x11b   : > { %v2123_v20 = vpop.eup %1658  ;;  %1684 = vtanh.f32 %v783_v13  ;;  %v755_v15 = vmul.f32 %v2120_v19, %v1993_v32 }
 0x11c   : > { %v2125_v22 = vpop.eup %1660  ;;  %1686 = vtanh.f32 %v785_v16 }
 0x11d   : > { %569 = vadd.xlane.f32.xlu1 %v558_v59  ;;  %v2127_v48 = vpop.eup %1662  ;;  %1688 = vtanh.f32 %v784_v18  ;;  %v678_v19 = vmul.f32 %v2125_v22, %v1993_v32 }
 0x11e   : > { %683 = vadd.xlane.f32.xlu0 %v675_v38  ;;  %v2130_v24 = vpop.eup %1664  ;;  %1690 = vtanh.f32 %v1999_v35  ;;  %v714_v35 = vmul.f32 %v1641_v62, %v1993_v32 }
 0x11f   : > { %v2136_v28 = vpop.eup %1666  ;;  %1692 = vtanh.f32 %v2003_v36  ;;  %v676_v36 = vmul.f32 %v1643_v2, %v1993_v32  ;;  %v638_v2 = vmul.f32 %v2101_v10, %v1993_v32 }
 0x120   : > { %v1669_v31 = vpop.eup %1668  ;;  %1694 = vtanh.f32 %v2009_v40 }
 0x121   : > { %647 = vadd.xlane.f32.xlu1 %v637_v27  ;;  %v1671_v37 = vpop.eup %1670  ;;  %v2146_v44 = vmul.f32 %v1669_v31, %v1993_v32  ;;  %1696 = vtanh.f32 %v2013_v41 }
 0x122   : > { %609 = vadd.xlane.f32.xlu0 %v598_v43  ;;  %v1673_v45 = vpop.eup %1672  ;;  %v2151_v21 = vmul.f32 %v1671_v37, %v1993_v32  ;;  %1698 = vtanh.f32 %v786_v25 }
 0x123   : > { %v1675_v46 = vpop.eup %1674  ;;  %v2154_v40 = vmul.f32 %v1673_v45, %v1993_v32  ;;  %1700 = vtanh.f32 %v706_v29 }
 0x124   : > { %v1677_v54 = vpop.eup %1676  ;;  %v2157_v4 = vmul.f32 %v1675_v46, %v1993_v32  ;;  %1702 = vtanh.f32 %v746_v33 }
 0x125   : > { %721 = vadd.xlane.f32.xlu1 %v714_v35  ;;  %v1679_v41 = vpop.eup %1678  ;;  %v2162_v50 = vmul.f32 %v1677_v54, %v1993_v32  ;;  %1704 = vtanh.f32 %v2020_v49 }
 0x126   : > { %685 = vadd.xlane.f32.xlu0 %v676_v36  ;;  %v1681_v51 = vpop.eup %1680  ;;  %v2168_v55 = vmul.f32 %v1679_v41, %v1993_v32  ;;  %1706 = vtanh.f32 %v2024_v52  ;;  %v781_v52 = vadd.f32 %v2077_v39, %v1920_v30 }
 0x127   : > { %v1683_v57 = vpop.eup %1682  ;;  %1708 = vtanh.f32 %v2027_v53  ;;  %v2173_v62 = vmul.f32 %v1681_v51, %v1993_v32 }
 0x128   : > { %v1685_v63 = vpop.eup %1684  ;;  %v2176_v49 = vmul.f32 %v1683_v57, %v1993_v32  ;;  %1710 = vtanh.f32 %v2031_v60 }
 0x129   : > { %571 = vadd.xlane.f32.xlu1 %v559_v6  ;;  %v1687_v14 = vpop.eup %1686  ;;  %v2184_v5 = vmul.f32 %v1685_v63, %v1993_v32  ;;  %1712 = vtanh.f32 %v2034_v61  ;;  %v756_v6 = vmul.f32 %v2130_v24, %v1993_v32 }
 0x12a   : > { %723 = vadd.xlane.f32.xlu0 %v715_v56  ;;  %v1689_v53 = vpop.eup %1688  ;;  %v2192_v60 = vmul.f32 %v1687_v14, %v1993_v32  ;;  %1714 = vtanh.f32 %v2039_v0  ;;  %v677_v0 = vmul.f32 %v2114_v17, %v1993_v32  ;;  %v754_v17 = vmul.f32 %v2123_v20, %v1993_v32 }
 0x12b   : > { %v1691_v8 = vpop.eup %1690  ;;  %v798_v30 = vmul.f32 %v1689_v53, %v1993_v32  ;;  %1716 = vtanh.f32 %v2042_v1  ;;  %v639_v20 = vmul.f32 %v2127_v48, %v1993_v32  ;;  %v717_v56 = vmul.f32 %v2136_v28, %v1993_v32 }
 0x12c   : > { %v1693_v9 = vpop.eup %1692  ;;  %v600_v61 = vmul.f32 %v1691_v8, %v1993_v32  ;;  %1718 = vtanh.f32 %v781_v52 }
 0x12d   : > { %649 = vadd.xlane.f32.xlu1 %v638_v2  ;;  %v1695_v10 = vpop.eup %1694  ;;  %v560_v26 = vmul.f32 %v1693_v9, %v1993_v32  ;;  %1720 = vtanh.f32 %v780_v7 }
 0x12e   : > { %611 = vadd.xlane.f32.xlu0 %v599_v58  ;;  %v1697_v39 = vpop.eup %1696  ;;  %v680_v11 = vmul.f32 %v1695_v10, %v1993_v32 }
 0x12f   : > { %v1699_v12 = vpop.eup %1698  ;;  %v640_v1 = vmul.f32 %v1697_v39, %v1993_v32  ;;  %v573_v24 = vsel %vm285_vm2, %v560_v26, 0.0 }
 0x130   : > { %v1701_v13 = vpop.eup %1700  ;;  %v800_v16 = vmul.f32 %v1699_v12, %v1993_v32  ;;  %v693_v28 = vsel %vm285_vm2, %v680_v11, 0.0 }
 0x131   : > { %725 = vadd.xlane.f32.xlu1 %v716_v34  ;;  %v1703_v59 = vpop.eup %1702  ;;  %v720_v18 = vmul.f32 %v1701_v13, %v1993_v32 }
 0x132   : > { %687 = vadd.xlane.f32.xlu0 %v677_v0  ;;  %v1705_v38 = vpop.eup %1704  ;;  %v760_v27 = vmul.f32 %v1703_v59, %v1993_v32 }
 0x133   : > { %v1707_v43 = vpop.eup %1706  ;;  %v834_v25 = vmul.f32 %v1705_v38, %v1993_v32 }
 0x134   : > { %v1709_v29 = vpop.eup %1708  ;;  %v835_v31 = vmul.f32 %v1707_v43, %v1993_v32 }
 0x135   : > { %763 = vadd.xlane.f32.xlu1 %v755_v15  ;;  %v1711_v33 = vpop.eup %1710  ;;  %v836_v37 = vmul.f32 %v1709_v29, %v1993_v32 }
 0x136   : > { %761 = vadd.xlane.f32.xlu0 %v754_v17  ;;  %v1713_v35 = vpop.eup %1712  ;;  %v838_v45 = vmul.f32 %v1711_v33, %v1993_v32 }
 0x137   : > { %v1715_v36 = vpop.eup %1714  ;;  %v837_v46 = vmul.f32 %v1713_v35, %v1993_v32 }
 0x138   : > { %v1717_v54 = vpop.eup %1716  ;;  %v839_v41 = vmul.f32 %v1715_v36, %v1993_v32 }
 0x139   : > { %689 = vadd.xlane.f32.xlu1 %v678_v19  ;;  %v840_v22 = vmul.f32 %v1717_v54, %v1993_v32  ;;  %v1719_v51 = vpop.eup %1718 }
 0x13a   : > { %651 = vadd.xlane.f32.xlu0 %v639_v20  ;;  %v1721_v48 = vpop.eup %1720  ;;  %v795_v57 = vmul.f32 %v1719_v51, %v1993_v32 }
 0x13b   : > { %v794_v63 = vmul.f32 %v1721_v48, %v1993_v32  ;;  %v613_v32 = vsel %vm285_vm2, %v600_v61, 0.0 }
 0x13d   : > { %765 = vadd.xlane.f32.xlu1 %v756_v6 }
 0x13e   : > { %727 = vadd.xlane.f32.xlu0 %v717_v56 }
 0x141   : > { %803 = vadd.xlane.f32.xlu1 %v795_v57 }
 0x142   : > { %801 = vadd.xlane.f32.xlu0 %v794_v63 }
 0x145   : > { %691 = vadd.xlane.f32.xlu1 %v2146_v44  ;;  %v653_v44 = vsel %vm285_vm2, %v640_v1, 0.0 }
 0x146   : > { %729 = vadd.xlane.f32.xlu0 %v2151_v21  ;;  %v813_v21 = vsel %vm285_vm2, %v800_v16, 0.0 }
 0x149   : > { %767 = vadd.xlane.f32.xlu1 %v2154_v40  ;;  %v733_v40 = vsel %vm285_vm2, %v720_v18, 0.0 }
 0x14a   : > { %805 = vadd.xlane.f32.xlu0 %v2157_v4  ;;  %v773_v4 = vsel %vm285_vm2, %v760_v27, 0.0 }
 0x14d   : > { %769 = vadd.xlane.f32.xlu1 %v2162_v50  ;;  %v853_v50 = vsel %vm285_vm2, %v840_v22, 0.0 }
 0x14e   : > { %731 = vadd.xlane.f32.xlu0 %v2168_v55  ;;  %v1312_v55 = vsel %vm1311_vm3, %v2047_v3, 0.0  ;;  %vm1403_vm3 = vcmask 670720  }
 0x151   : > { %771 = vadd.xlane.f32.xlu1 %v2176_v49  ;;  %v2248_v49 = vand.u32 127, %v530_v42 }
 0x152   : > { %807 = vadd.xlane.f32.xlu0 %v2184_v5 }
 0x153   : > { %v869_v14 = vadd.s32 4294967288, %v2248_v49  ;;  %v2253_v52 = vsub.s32 %v2248_v49, %v1929_v47  ;;  %v876_v58 = vadd.s32 4294967280, %v2248_v49  ;;  %v883_v0 = vadd.s32 4294967272, %v2248_v49 }
 0x154   : > { %v897_v63 = vadd.s32 4294967256, %v2248_v49 }
 0x155   : > { %811 = vadd.xlane.f32.xlu1 %v2192_v60  ;;  %v2256_v53 = vsub.s32 %v869_v14, %v1929_v47  ;;  %v2262_v8 = vsub.s32 %v876_v58, %v1929_v47  ;;  %v2275_v15 = vsub.s32 %v883_v0, %v1929_v47 }
 0x156   : > { %809 = vadd.xlane.f32.xlu0 %v798_v30 }
 0x159   : > { %614 = vadd.xlane.f32.xlu1 %v613_v32 }
 0x15a   : > { %574 = vadd.xlane.f32.xlu0 %v573_v24 }
 0x15d   : > { %694 = vadd.xlane.f32.xlu1 %v693_v28 }
 0x15e   : > { %654 = vadd.xlane.f32.xlu0 %v653_v44 }
 0x161   : > { %814 = vadd.xlane.f32.xlu1 %v813_v21 }
 0x162   : > { %734 = vadd.xlane.f32.xlu0 %v733_v40  ;;  %v2302_v40 = vsub.s32 %v897_v63, %v1929_v47 }
 0x165   : > { %841 = vadd.xlane.f32.xlu1 %v834_v25  ;;  %v890_v25 = vadd.s32 4294967264, %v2248_v49 }
 0x166   : > { %774 = vadd.xlane.f32.xlu0 %v773_v4 }
 0x167   : > { %v2285_v35 = vsub.s32 %v890_v25, %v1929_v47 }
 0x169   : > { %845 = vadd.xlane.f32.xlu1 %v836_v37 }
 0x16a   : > { %843 = vadd.xlane.f32.xlu0 %v835_v31 }
 0x16d   : > { %847 = vadd.xlane.f32.xlu1 %v837_v46 }
 0x16e   : > { %849 = vadd.xlane.f32.xlu0 %v838_v45 }
 0x171   : > { %854 = vadd.xlane.f32.xlu1 %v853_v50 }
 0x172   : > { %851 = vadd.xlane.f32.xlu0 %v839_v41 }
 0x175   : > { %1313 = vadd.xlane.f32.xlu1 %v1312_v55 }
 0x18e   : > { %v602_v2 = vpop.xlane.xlu1 %601 }
 0x18f   : > { %v562_v5 = vpop.xlane.xlu0 %561  ;;  %v922_v3 = vrot.slane %v602_v2, %v2253_v52 }
 0x190   : > { %v868_v30 = vrot.slane %v562_v5, %v2253_v52 }
 0x192   : > { %v604_v7 = vpop.xlane.xlu1 %603 }
 0x193   : > { %v926_v42 = vrot.slane %v604_v7, %v2256_v53  ;;  %v564_v60 = vpop.xlane.xlu0 %563 }
 0x194   : > { %v873_v9 = vrot.slane %v564_v60, %v2256_v53 }
 0x195   : > { %v927_v61 = vsel %vm874_vm4, %v926_v42, %v922_v3 }
 0x196   : > { %v875_v10 = vsel %vm874_vm4, %v873_v9, %v868_v30  ;;  %v606_v34 = vpop.xlane.xlu1 %605 }
 0x197   : > { %v931_v26 = vrot.slane %v606_v34, %v2262_v8  ;;  %v566_v39 = vpop.xlane.xlu0 %565 }
 0x198   : > { %v880_v11 = vrot.slane %v566_v39, %v2262_v8 }
 0x199   : > { %v932_v12 = vsel %vm881_vm5, %v931_v26, %v927_v61 }
 0x19a   : > { %v882_v1 = vsel %vm881_vm5, %v880_v11, %v875_v10  ;;  %v644_v13 = vpop.xlane.xlu1 %643 }
 0x19b   : > { %v968_v16 = vrot.slane %v644_v13, %v2256_v53  ;;  %v642_v59 = vpop.xlane.xlu0 %641 }
 0x19c   : > { %v964_v18 = vrot.slane %v642_v59, %v2253_v52 }
 0x19e   : > { %v969_v38 = vsel %vm874_vm4, %v968_v16, %v964_v18  ;;  %v608_v17 = vpop.xlane.xlu1 %607 }
 0x19f   : > { %v936_v27 = vrot.slane %v608_v17, %v2275_v15  ;;  %v568_v43 = vpop.xlane.xlu0 %567 }
 0x1a0   : > { %v887_v29 = vrot.slane %v568_v43, %v2275_v15  ;;  %v904_v43 = vadd.s32 4294967248, %v2248_v49 }
 0x1a1   : > { %v937_v31 = vsel %vm888_vm6, %v936_v27, %v932_v12 }
 0x1a2   : > { %v889_v33 = vsel %vm888_vm6, %v887_v29, %v882_v1  ;;  %v682_v19 = vpop.xlane.xlu1 %681 }
 0x1a3   : > { %v646_v37 = vpop.xlane.xlu0 %645  ;;  %v1006_v41 = vrot.slane %v682_v19, %v2253_v52 }
 0x1a4   : > { %v973_v20 = vrot.slane %v646_v37, %v2262_v8 }
 0x1a6   : > { %v974_v45 = vsel %vm881_vm5, %v973_v20, %v969_v38  ;;  %v570_v36 = vpop.xlane.xlu1 %569 }
 0x1a7   : > { %v894_v46 = vrot.slane %v570_v36, %v2285_v35  ;;  %v684_v54 = vpop.xlane.xlu0 %683 }
 0x1a8   : > { %v1010_v6 = vrot.slane %v684_v54, %v2256_v53 }
 0x1a9   : > { %v896_v22 = vsel %vm895_vm7, %v894_v46, %v889_v33 }
 0x1aa   : > { %v1011_v51 = vsel %vm874_vm4, %v1010_v6, %v1006_v41  ;;  %v648_v56 = vpop.xlane.xlu1 %647 }
 0x1ab   : > { %v978_v48 = vrot.slane %v648_v56, %v2275_v15  ;;  %v610_v57 = vpop.xlane.xlu0 %609 }
 0x1ac   : > { %v941_v32 = vrot.slane %v610_v57, %v2285_v35 }
 0x1ad   : > { %v2298_v24 = vsel %vm888_vm6, %v978_v48, %v974_v45 }
 0x1ae   : > { %v942_v28 = vsel %vm895_vm7, %v941_v32, %v937_v31  ;;  %v722_v44 = vpop.xlane.xlu1 %721  ;;  %v2337_v31 = vsub.s32 %v904_v43, %v1929_v47 }
 0x1af   : > { %v686_v21 = vpop.xlane.xlu0 %685  ;;  %v1048_v5 = vrot.slane %v722_v44, %v2253_v52 }
 0x1b0   : > { %v1015_v4 = vrot.slane %v686_v21, %v2262_v8 }
 0x1b2   : > { %v1016_v50 = vsel %vm881_vm5, %v1015_v4, %v1011_v51  ;;  %v572_v55 = vpop.xlane.xlu1 %571 }
 0x1b3   : > { %v901_v14 = vrot.slane %v572_v55, %v2302_v40  ;;  %v724_v2 = vpop.xlane.xlu0 %723 }
 0x1b4   : > { %v1052_v58 = vrot.slane %v724_v2, %v2256_v53 }
 0x1b5   : > { %v903_v7 = vsel %vm902_vm8, %v901_v14, %v896_v22 }
 0x1b6   : > { %v1053_v3 = vsel %vm874_vm4, %v1052_v58, %v1048_v5  ;;  %v650_v42 = vpop.xlane.xlu1 %649 }
 0x1b7   : > { %v612_v60 = vpop.xlane.xlu0 %611  ;;  %v983_v49 = vrot.slane %v650_v42, %v2285_v35 }
 0x1b8   : > { %v946_v33 = vrot.slane %v612_v60, %v2302_v40 }
 0x1b9   : > { %v984_v21 = vsel %vm895_vm7, %v983_v49, %v2298_v24 }
 0x1ba   : > { %v726_v30 = vpop.xlane.xlu1 %725  ;;  %v947_v46 = vsel %vm902_vm8, %v946_v33, %v942_v28 }
 0x1bb   : > { %v688_v9 = vpop.xlane.xlu0 %687  ;;  %v1057_v22 = vrot.slane %v726_v30, %v2262_v8 }
 0x1bc   : > { %v1020_v19 = vrot.slane %v688_v9, %v2275_v15 }
 0x1bd   : > { %v1058_v58 = vsel %vm881_vm5, %v1057_v22, %v1053_v3 }
 0x1be   : > { %v2311_v61 = vpop.xlane.xlu1 %763  ;;  %v1021_v51 = vsel %vm888_vm6, %v1020_v19, %v1016_v50 }
 0x1bf   : > { %v2313_v10 = vpop.xlane.xlu0 %761  ;;  %v1094_v3 = vrot.slane %v2311_v61, %v2256_v53 }
 0x1c2   : > { %v690_v34 = vpop.xlane.xlu1 %689 }
 0x1c3   : > { %v652_v26 = vpop.xlane.xlu0 %651  ;;  %v1025_v20 = vrot.slane %v690_v34, %v2285_v35 }
 0x1c4   : > { %v988_v41 = vrot.slane %v652_v26, %v2302_v40 }
 0x1c5   : > { %v1026_v57 = vsel %vm895_vm7, %v1025_v20, %v1021_v51 }
 0x1c6   : > { %v2315_v39 = vpop.xlane.xlu1 %765  ;;  %v989_v14 = vsel %vm902_vm8, %v988_v41, %v984_v21 }
 0x1c7   : > { %v728_v0 = vpop.xlane.xlu0 %727  ;;  %v1099_v19 = vrot.slane %v2315_v39, %v2262_v8 }
 0x1c8   : > { %v1062_v63 = vrot.slane %v728_v0, %v2275_v15 }
 0x1ca   : > { %v2317_v11 = vpop.xlane.xlu1 %803  ;;  %v1063_v24 = vsel %vm888_vm6, %v1062_v63, %v1058_v58 }
 0x1cb   : > { %v2319_v12 = vpop.xlane.xlu0 %801 }
 0x1cc   : > { %v1132_v20 = vrot.slane %v2319_v12, %v2253_v52 }
 0x1ce   : > { %v692_v1 = vpop.xlane.xlu1 %691 }
 0x1cf   : > { %v730_v13 = vpop.xlane.xlu0 %729  ;;  %v1030_v54 = vrot.slane %v692_v1, %v2302_v40 }
 0x1d0   : > { %v1067_v50 = vrot.slane %v730_v13, %v2285_v35 }
 0x1d1   : > { %v1031_v4 = vsel %vm902_vm8, %v1030_v54, %v1026_v57 }
 0x1d2   : > { %v2321_v16 = vpop.xlane.xlu1 %767  ;;  %v1068_v9 = vsel %vm895_vm7, %v1067_v50, %v1063_v24 }
 0x1d3   : > { %v2323_v59 = vpop.xlane.xlu0 %805 }
 0x1d6   : > { %v2325_v18 = vpop.xlane.xlu1 %769 }
 0x1d7   : > { %v732_v38 = vpop.xlane.xlu0 %731  ;;  %v1109_v49 = vrot.slane %v2325_v18, %v2285_v35 }
 0x1d8   : > { %v1072_v2 = vrot.slane %v732_v38, %v2302_v40  ;;  %v1090_v38 = vrot.slane %v2313_v10, %v2253_v52  ;;  %v1141_v10 = vrot.slane %v2323_v59, %v2262_v8 }
 0x1da   : > { %v2327_v17 = vpop.xlane.xlu1 %771  ;;  %v1073_v0 = vsel %vm902_vm8, %v1072_v2, %v1068_v9  ;;  %v1095_v61 = vsel %vm874_vm4, %v1094_v3, %v1090_v38 }
 0x1db   : > { %v2329_v27 = vpop.xlane.xlu0 %807  ;;  %v1114_v39 = vrot.slane %v2327_v17, %v2302_v40  ;;  %v1100_v54 = vsel %vm881_vm5, %v1099_v19, %v1095_v61 }
 0x1de   : > { %v2332_v25 = vpop.xlane.xlu1 %811 }
 0x1df   : > { %v2334_v29 = vpop.xlane.xlu0 %809 }
 0x1e0   : > { %v1151_v17 = vrot.slane %v2334_v29, %v2285_v35 }
 0x1e2   : > { %v615_v37 = vpop.xlane.xlu1 %614 }
 0x1e3   : > { %v951_v45 = vrot.slane %v615_v37, %v2337_v31  ;;  %v575_v36 = vpop.xlane.xlu0 %574  ;;  %v1136_v37 = vrot.slane %v2317_v11, %v2256_v53  ;;  %v1146_v11 = vrot.slane %v2329_v27, %v2275_v15 }
 0x1e4   : > { %v908_v47 = vrot.slane %v575_v36, %v2337_v31 }
 0x1e5   : > { %v952_v6 = vsel %vm909_vm9, %v951_v45, %v947_v46  ;;  %v1104_v45 = vrot.slane %v2321_v16, %v2275_v15  ;;  %v1137_v41 = vsel %vm874_vm4, %v1136_v37, %v1132_v20 }
 0x1e6   : > { %v910_v56 = vsel %vm909_vm9, %v908_v47, %v903_v7  ;;  %v695_v48 = vpop.xlane.xlu1 %694 }
 0x1e7   : > { %v1206_v32 = vsel %vm285_vm2, %v910_v56, %v952_v6  ;;  %v1035_v28 = vrot.slane %v695_v48, %v2337_v31  ;;  %v655_v44 = vpop.xlane.xlu0 %654  ;;  %v1105_v18 = vsel %vm888_vm6, %v1104_v45, %v1100_v54  ;;  %v1156_v48 = vrot.slane %v2332_v25, %v2302_v40 }
 0x1e8   : > { %v993_v55 = vrot.slane %v655_v44, %v2337_v31 }
 0x1e9   : > { %v1036_v5 = vsel %vm909_vm9, %v1035_v28, %v1031_v4 }
 0x1ea   : > { %v994_v7 = vsel %vm909_vm9, %v993_v55, %v989_v14  ;;  %v815_v42 = vpop.xlane.xlu1 %814 }
 0x1eb   : > { %v1208_v60 = vsel %vm1207_vm10, %v1206_v32, %v994_v7  ;;  %v735_v30 = vpop.xlane.xlu0 %734  ;;  %v1161_v28 = vrot.slane %v815_v42, %v2337_v31  ;;  %v1744_v42 = vmov 0  }
 0x1ec   : > { %v1210_v34 = vsel %vm1209_vm11, %v1208_v60, %v1036_v5  ;;  %v1077_v26 = vrot.slane %v735_v30, %v2337_v31  ;;  %1604 = vset.pattern.permute.xlu0 %v1744_v42  ;;  %1605 = vset.pattern.permute.xlu1 %v1744_v42 }
 0x1ee   : > { %v1078_v1 = vsel %vm909_vm9, %v1077_v26, %v1073_v0  ;;  %v842_v13 = vpop.xlane.xlu1 %841 }
 0x1ef   : > { %v1212_v43 = vsel %vm1211_vm12, %v1210_v34, %v1078_v1  ;;  %v775_v33 = vpop.xlane.xlu0 %774  ;;  %v1174_v12 = vrot.slane %v842_v13, %v2253_v52  ;;  %v1142_v52 = vsel %vm881_vm5, %v1141_v10, %v1137_v41 }
 0x1f0   : > { %v1119_v47 = vrot.slane %v775_v33, %v2337_v31 }
 0x1f2   : > { %v846_v36 = vpop.xlane.xlu1 %845 }
 0x1f3   : > { %v844_v46 = vpop.xlane.xlu0 %843  ;;  %v1183_v59 = vrot.slane %v846_v36, %v2262_v8  ;;  %v1147_v8 = vsel %vm888_vm6, %v1146_v11, %v1142_v52 }
 0x1f4   : > { %v1178_v16 = vrot.slane %v844_v46, %v2256_v53  ;;  %v1110_v53 = vsel %vm895_vm7, %v1109_v49, %v1105_v18  ;;  %v1152_v32 = vsel %vm895_vm7, %v1151_v17, %v1147_v8 }
 0x1f5   : > { %v1115_v56 = vsel %vm902_vm8, %v1114_v39, %v1110_v53  ;;  %v1157_v25 = vsel %vm902_vm8, %v1156_v48, %v1152_v32 }
 0x1f6   : > { %v1179_v6 = vsel %vm874_vm4, %v1178_v16, %v1174_v12  ;;  %v848_v27 = vpop.xlane.xlu1 %847  ;;  %v1120_v29 = vsel %vm909_vm9, %v1119_v47, %v1115_v56 }
 0x1f7   : > { %v850_v22 = vpop.xlane.xlu0 %849  ;;  %v1188_v51 = vrot.slane %v848_v27, %v2275_v15  ;;  %v1184_v57 = vsel %vm881_vm5, %v1183_v59, %v1179_v6  ;;  %v1214_v55 = vsel %vm1213_vm13, %v1212_v43, %v1120_v29 }
 0x1f8   : > { %v1193_v63 = vrot.slane %v850_v22, %v2285_v35  ;;  %v1162_v35 = vsel %vm909_vm9, %v1161_v28, %v1157_v25 }
 0x1f9   : > { %v1189_v15 = vsel %vm888_vm6, %v1188_v51, %v1184_v57  ;;  %v1216_v58 = vsel %vm1215_vm14, %v1214_v55, %v1162_v35 }
 0x1fa   : > { %v855_v44 = vpop.xlane.xlu1 %854  ;;  %v1194_v14 = vsel %vm895_vm7, %v1193_v63, %v1189_v15 }
 0x1fb   : > { %v852_v21 = vpop.xlane.xlu0 %851  ;;  %v1203_v4 = vrot.slane %v855_v44, %v2337_v31 }
 0x1fc   : > { %v1198_v50 = vrot.slane %v852_v21, %v2302_v40  ;;  %v1315_v40 = vsel %vm285_vm2, %v2173_v62, 0.0  ;;  %vm1400_vm2 = vcmask 662528  }
 0x1fe   : > { %v1199_v2 = vsel %vm902_vm8, %v1198_v50, %v1194_v14  ;;  %v1314_v30 = vpop.xlane.xlu1 %1313 }
 0x1ff   : > { %v1204_v5 = vsel %vm909_vm9, %v1203_v4, %v1199_v2  ;;  %v1320_v26 = vrot.slane %v1314_v30, 1 }
 0x200   : > { %v1218_v7 = vsel %vm1217_vm15, %v1216_v58, %v1204_v5 }
 0x201   : > { %v1220_v31 = vsel %vm1219_vm1, %v1218_v7, -inf }
 0x202   : > { %1221 = vmax.xlane.f32.xlu0 %v1220_v31 }
 0x206   : > { %1316 = vadd.xlane.f32.xlu0 %v1315_v40 }
 0x28b   : > { %v1222_v24 = vpop.xlane.xlu0 %1221 }
 0x28c   : > { %v1223_v60 = vsub.f32 %v1218_v7, %v1222_v24 }
 0x28e   : > { %v1224_v9 = vmul.f32 1.442695, %v1223_v60 }
 0x28f   : > { %v1317_v34 = vpop.xlane.xlu0 %1316 }
 0x290   : > { %1722 = vpow2.f32 %v1224_v9  ;;  %v1321_v0 = vrot.slane %v1317_v34, 1 }
 0x292   : > { %v1322_v1 = vsel %vm1217_vm15, %v1320_v26, %v1321_v0 }
 0x293   : > { %v1324_v13 = vmax.f32 %v1222_v24, %v1322_v1 }
 0x295   : > { %1327 = vperm.xlu0 %1604, %v1324_v13   ;;  %v1336_v61 = vrot.slane %v1324_v13, 7 }
 0x297   : > { %v1338_v10 = vsub.f32 %v1314_v30, %v1336_v61  ;;  %v1339_v49 = vsub.f32 %v1317_v34, %v1336_v61 }
 0x299   : > { %v1340_v46 = vmul.f32 1.442695, %v1338_v10  ;;  %v1342_v39 = vmul.f32 1.442695, %v1339_v49 }
 0x29d   : > { %v1723_v3 = vpop.eup %1722 }
 0x29e   : > { %v1226_v38 = vsel %vm1219_vm1, %v1723_v3, 0.0 }
 0x29f   : > { %1227 = vadd.xlane.f32.xlu1 %v1226_v38 }
 0x310   : > { %v1328_v62 = vpop.permute.xlu0 %1327 }
 0x311   : > { %v1330_v43 = vsub.f32 %v1218_v7, %v1328_v62 }
 0x313   : > { %v1331_v33 = vmul.f32 1.442695, %v1330_v43 }
 0x315   : > { %1724 = vpow2.f32 %v1331_v33 }
 0x322   : > { %v1725_v19 = vpop.eup %1724 }
 0x323   : > { %v1333_v37 = vsel %vm1219_vm1, %v1725_v19, 0.0 }
 0x324   : > { %1334 = vadd.xlane.f32.xlu1 %v1333_v37 }
 0x328   : > { %v1228_v20 = vpop.xlane.xlu1 %1227 }
 0x329   : > { %1726 = vrcp.f32 %v1228_v20 }
 0x32a   : > { %1728 = vpow2.f32 %v1340_v46 }
 0x32b   : > { %1730 = vpow2.f32 %v1342_v39 }
 0x336   : > { %v1727_v45 = vpop.eup %1726 }
 0x337   : > { %v1230_v36 = vmul.f32 %v1727_v45, %v1723_v3  ;;  %v1729_v11 = vpop.eup %1728 }
 0x338   : > { %v1731_v12 = vpop.eup %1730  ;;  %v1346_v16 = vrot.slane %v1729_v11, 1 }
 0x339   : > { %1588 = vmatmul.mubr.msk.f32.vlgmr.msra.gmra.mxu0 %vm1219_vm1, %v1230_v36  ;;  %v1347_v54 = vrot.slane %v1731_v12, 1  ;;  %v1388_v22 = vrot.slane %v1230_v36, 7 }
 0x33b   : > { %v1348_v59 = vsel %vm1217_vm15, %v1346_v16, %v1347_v54 }
 0x3ad   : > { %v1335_v47 = vpop.xlane.xlu1 %1334 }
 0x3ae   : > { %v1350_v41 = vadd.f32 %v1348_v59, %v1335_v47 }
 0x3b0   : > { %1732 = vrcp.f32 %v1350_v41 }
 0x3bd   : > { %v1733_v18 = vpop.eup %1732 }
 0x3be   : > { %v1353_v17 = vrot.slane %v1733_v18, 7 }
 0x3c0   : > { %v1355_v6 = vmul.f32 %v1729_v11, %v1353_v17  ;;  %v1356_v27 = vmul.f32 %v1731_v12, %v1353_v17 }
 0x3c2   : > { %1359 = vperm.xlu1 %1605, %v1355_v6   ;;  %v1369_v52 = vsub.f32 1.0, %v1355_v6  ;;  %v1370_v53 = vsub.f32 1.0, %v1356_v27 }
 0x3c6   : > { %1364 = vperm.xlu1 %1605, %v1356_v27  }
 0x3ca   : > { %1373 = vperm.xlu1 %1605, %v1369_v52  }
 0x3ce   : > { %1378 = vperm.xlu1 %1605, %v1370_v53  }
 0x3d2   : > { %1389 = vrot.lane.b32.xlu1 %v1388_v22, %s1745_s8 }
 0x3d6   : > { %1392 = vrot.lane.b32.xlu1 %v1355_v6, %s1746_s9 }
 0x3da   : > { %1394 = vrot.lane.b32.xlu1 %v1356_v27, %s1746_s9 }
 0x3f9   : > { %v1303_v51 = vpop.f32.mrf.mxu0 }
 0x3fa   : > { %v1382_v57 = vrot.slane %v1303_v51, 7 }
 0x3fb   : > { %v1589_v56 = vpop.f32.mrf.mxu0 }
 0x43d   : > { %v1360_v8 = vpop.permute.xlu1 %1359 }
 0x43e   : > { %v1367_v28 = vmul.f32 %v1360_v8, %v1894_v23 }
 0x441   : > { %v1365_v48 = vpop.permute.xlu1 %1364 }
 0x442   : > { %v1368_v21 = vmul.f32 %v1365_v48, %v1894_v23 }
 0x445   : > { %v1374_v29 = vpop.permute.xlu1 %1373 }
 0x446   : > { %v1384_v32 = vmul.f32 %v1382_v57, %v1374_v29 }
 0x448   : > { %v1386_v4 = vadd.f32 %v1384_v32, %v1367_v28 }
 0x449   : > { %v1379_v63 = vpop.permute.xlu1 %1378 }
 0x44a   : > { %v1385_v15 = vmul.f32 %v1382_v57, %v1379_v63 }
 0x44c   : > { %v1387_v50 = vadd.f32 %v1385_v15, %v1368_v21 }
 0x44d   : > { %v1390_v44 = vpop.permute.xlu1 %1389 }
 0x44e   : > { %v1398_v55 = vsel %vm288_vm0, %v1386_v4, %v1390_v44  ;;  %v1399_v2 = vsel %vm288_vm0, %v1387_v50, %v1390_v44 }
 0x451   : > { %v1393_v25 = vpop.permute.xlu1 %1392 }
 0x452   : > { %v1401_v14 = vsel %vm1400_vm2, %v1398_v55, %v1393_v25 }
 0x453   : > { %v1404_v35 = vsel %vm1403_vm3, %v1401_v14, 0.0 }
 0x454   : > { %1406 = vst [vmem:[%s256_s12 - $0x1] sm:$0xfe] %v1404_v35 }
 0x455   : > { %v1395_v5 = vpop.permute.xlu1 %1394 }
 0x456   : > { %v1402_v58 = vsel %vm1400_vm2, %v1399_v2, %v1395_v5 }
 0x457   : > { %v1405_v7 = vsel %vm1403_vm3, %v1402_v58, 0.0 }
 0x458   : > { %1407 = vst [vmem:[%s256_s12 + $0x7] sm:$0x1] %v1405_v7 }
 0x459 PF: > { %s15_s18 = sadd.s32 1, %s1740_s18  }
 0x45a   : > { %p12_p4 = scmp.ge.s32.totalorder %s15_s18, 4  }
 0x45c   :  { %14 = sbr.rel (!%p12_p4) target bundleno = 1 (0x1), region = 76 }

</bundles_post_ra>
